<compile_context>
chip_gen: v6e
topology: v6e:2x2x1
jax: 0.10.0
libtpu: 0.0.40
codegen_flags: <defaults>
</compile_context>

<pallas_src>
import functools

import jax
import jax.numpy as jnp
from jax.experimental import pallas as pl
from jax.experimental.pallas import tpu as pltpu

_LANE = 128
_DEFAULT_MAX_HW_TILE = 8192   # upper bound on the lane tile; VMEM budget caps it


def _channel_attention_kernel(x_ref, w1t_ref, w2t_ref, out_ref,
                              sum_acc, max_acc,
                              *, hw, hw_tile, inv_hw, needs_mask):
    # x_ref:   (Bt, C, HWt)   current spatial slab
    # w1t_ref: (C, Cr)        fc1.weight.T  (resident)
    # w2t_ref: (Cr, C)        fc2.weight.T  (resident)
    # out_ref: (Bt, C)
    # sum_acc/max_acc: (Bt, C) f32 running reduced accumulators
    s = pl.program_id(1)
    n_s = pl.num_programs(1)

    @pl.when(s == 0)
    def _init():
        sum_acc[...] = jnp.zeros(sum_acc.shape, dtype=sum_acc.dtype)
        max_acc[...] = jnp.full(max_acc.shape, -jnp.inf, dtype=max_acc.dtype)

    x = x_ref[...].astype(jnp.float32)  # (Bt, C, HWt)

    if needs_mask:
        # Masked path only on the (possibly partial) last step.
        @pl.when(s == n_s - 1)
        def _tail_step():
            lane = jax.lax.broadcasted_iota(jnp.int32, x.shape, 2) + s * hw_tile
            valid = lane < hw
            sum_acc[...] = sum_acc[...] + jnp.sum(
                jnp.where(valid, x, 0.0), axis=-1)
            max_acc[...] = jnp.maximum(
                max_acc[...], jnp.max(jnp.where(valid, x, -jnp.inf), axis=-1))

        @pl.when(s < n_s - 1)
        def _body_step():
            sum_acc[...] = sum_acc[...] + jnp.sum(x, axis=-1)
            max_acc[...] = jnp.maximum(max_acc[...], jnp.max(x, axis=-1))
    else:
        sum_acc[...] = sum_acc[...] + jnp.sum(x, axis=-1)
        max_acc[...] = jnp.maximum(max_acc[...], jnp.max(x, axis=-1))

    @pl.when(s == n_s - 1)
    def _finalize():
        avg = sum_acc[...] * inv_hw      # (Bt, C)
        mx = max_acc[...]                # (Bt, C)

        def fc(v):
            h = jnp.dot(v, w1t_ref[...], preferred_element_type=jnp.float32)
            h = jnp.maximum(h, 0.0)
            return jnp.dot(h, w2t_ref[...], preferred_element_type=jnp.float32)

        # Two tiny MXU chains instead of a sublane concat (avoids a VMEM relayout).
        out_ref[...] = jax.nn.sigmoid(fc(avg) + fc(mx)).astype(out_ref.dtype)


def _vmem_budget():
    """Per-chip (x-tile budget, scoped-vmem cap) in bytes."""
    try:
        info = pltpu.get_tpu_info()
        vmem = int(getattr(info, "vmem_capacity_bytes", 64 << 20))
    except Exception:  # pragma: no cover - conservative fallback
        vmem = 64 << 20
    if vmem <= (64 << 20):          # v7x-class: 64 MiB per TensorCore
        return 12 << 20, 56 << 20
    return 16 << 20, 100 << 20      # v5e / v6e: 128 MiB


def channel_attention(x, w1, w2, *, max_hw_tile=_DEFAULT_MAX_HW_TILE):
    """x: (B, C, H, W).  w1: (C//r, C), w2: (C, C//r)  (PyTorch Linear layout)."""
    B, C, H, W = x.shape
    HW = H * W
    x_flat = x.reshape(B, C, HW)
    w1t = jnp.asarray(w1).T  # (C, Cr)
    w2t = jnp.asarray(w2).T  # (Cr, C)
    Cr = w1t.shape[1]

    tile_budget, vmem_cap = _vmem_budget()

    # Batch tile: out block (Bt, C) needs Bt % 8 == 0 or Bt == B ((8,128) rule).
    # Prefer a >=2-trip parallel batch axis (feeds both TCs on v7x) when B > 8.
    Bt = 8 if (B % 8 == 0 and B > 8) else B

    # Lane tile: biggest multiple of 128 within the VMEM tile budget; fall back
    # to the full extent when H*W < 128.
    itemsize = jnp.dtype(x.dtype).itemsize
    if HW < _LANE:
        HWt = HW
    else:
        budget_lanes = max(_LANE,
                           (tile_budget // max(Bt * C * itemsize, 1))
                           // _LANE * _LANE)
        HWt = max(_LANE, min(max_hw_tile, (HW // _LANE) * _LANE, budget_lanes))
    n_s = pl.cdiv(HW, HWt)
    needs_mask = (HW % HWt) != 0

    kernel = functools.partial(
        _channel_attention_kernel,
        hw=HW, hw_tile=HWt, inv_hw=float(1.0 / HW), needs_mask=needs_mask)

    # Scoped-VMEM sizing: double-buffered x tile + resident weights (2 bufs each
    # by default) + tiny accumulators + output, with headroom; clamped to a
    # per-generation cap but never below what the kernel actually needs.
    x_tile_bytes = Bt * C * HWt * itemsize
    acc_bytes = 2 * Bt * C * 4
    w_bytes = 4 * C * Cr * 4
    out_bytes = 2 * Bt * C * 4
    needed = 2 * x_tile_bytes + acc_bytes + w_bytes + out_bytes
    vmem_limit = int(max(min(max(needed + (4 << 20), 32 << 20), vmem_cap),
                         needed + (2 << 20)))

    out = pl.pallas_call(
        kernel,
        out_shape=jax.ShapeDtypeStruct((B, C), jnp.float32),
        grid_spec=pltpu.PrefetchScalarGridSpec(
            num_scalar_prefetch=0,
            grid=(B // Bt, n_s),
            in_specs=[
                pl.BlockSpec((Bt, C, HWt), lambda b, s: (b, 0, s)),
                pl.BlockSpec((C, Cr), lambda b, s: (0, 0)),   # resident weights
                pl.BlockSpec((Cr, C), lambda b, s: (0, 0)),   # resident weights
            ],
            out_specs=pl.BlockSpec((Bt, C), lambda b, s: (b, 0)),
            scratch_shapes=[
                pltpu.VMEM((Bt, C), jnp.float32),  # running sum (reduced)
                pltpu.VMEM((Bt, C), jnp.float32),  # running max (reduced)
            ],
        ),
        compiler_params=pltpu.CompilerParams(
            dimension_semantics=("parallel", "arbitrary"),
            vmem_limit_bytes=vmem_limit,
        ),
    )(x_flat, w1t, w2t)

    return out.reshape(B, C, 1, 1)


def _reference(x, w1, w2):
    """Pure-JAX reference mirroring the PyTorch forward (f32 math)."""
    xf = x.astype(jnp.float32)
    avg = jnp.mean(xf, axis=(2, 3))
    mx = jnp.max(xf, axis=(2, 3))

    def fc(v):
        return jnp.maximum(v @ w1.T, 0.0) @ w2.T

    B, C = avg.shape
    return jax.nn.sigmoid(fc(avg) + fc(mx)).reshape(B, C, 1, 1)


if __name__ == "__main__":
    # Small shapes consistent with the module: batch=2, channels=8, spatial=16, reduction=4.
    B, C, H, W = 2, 8, 16, 16
    reduction_ratio = 4
    Cr = C // reduction_ratio

    key = jax.random.PRNGKey(0)
    kx, k1, k2, kx2 = jax.random.split(key, 4)

    x = jax.random.normal(kx, (B, C, H, W), dtype=jnp.float32)
    # "Linear(no bias)" weights in PyTorch layout: (out_features, in_features).
    w1 = jax.random.uniform(k1, (Cr, C), dtype=jnp.float32, minval=-0.5, maxval=0.5)
    w2 = jax.random.uniform(k2, (C, Cr), dtype=jnp.float32, minval=-0.5, maxval=0.5)

    ref = _reference(x, w1, w2)

    # 1) Default tiling (single HW step at this small size).
    out = jax.block_until_ready(channel_attention(x, w1, w2))
    assert out.shape == (B, C, 1, 1), out.shape
    assert jnp.allclose(out, ref, atol=1e-5, rtol=1e-5), float(jnp.max(jnp.abs(out - ref)))

    # 2) Force a multi-step HW grid: exercises the reduced-accumulator pipeline.
    out2 = jax.block_until_ready(channel_attention(x, w1, w2, max_hw_tile=128))
    assert jnp.allclose(out2, ref, atol=1e-5, rtol=1e-5), float(jnp.max(jnp.abs(out2 - ref)))

    # 3) H*W not a multiple of the lane tile + all-negative values:
    #    exercises the masked tail step (sum masked to 0, max masked to -inf).
    x_odd = -jnp.abs(jax.random.normal(kx2, (B, C, 16, 15), dtype=jnp.float32)) - 0.1
    ref_odd = _reference(x_odd, w1, w2)
    out3 = jax.block_until_ready(channel_attention(x_odd, w1, w2, max_hw_tile=128))
    assert jnp.allclose(out3, ref_odd, atol=1e-5, rtol=1e-5), float(jnp.max(jnp.abs(out3 - ref_odd)))

    # 4) bf16 activations: halved HBM bytes, f32 accumulation inside the kernel.
    x_bf16 = x.astype(jnp.bfloat16)
    ref_bf16 = _reference(x_bf16, w1, w2)
    out4 = jax.block_until_ready(channel_attention(x_bf16, w1, w2, max_hw_tile=128))
    assert jnp.allclose(out4, ref_bf16, atol=2e-2, rtol=2e-2), float(jnp.max(jnp.abs(out4 - ref_bf16)))

    print("KERNEL_OK")
</pallas_src>

<mosaic_0001>
module attributes {stable_mosaic.version = 11 : i64} {
  func.func @_channel_attention_kernel(%arg0: i32, %arg1: i32, %arg2: memref<2x8x256xf32, #tpu.memory_space<vmem>>, %arg3: memref<8x2xf32, #tpu.memory_space<vmem>>, %arg4: memref<2x8xf32, #tpu.memory_space<vmem>>, %arg5: memref<2x8xf32, #tpu.memory_space<vmem>>, %arg6: memref<2x8xf32, #tpu.memory_space<vmem>>, %arg7: memref<2x8xf32, #tpu.memory_space<vmem>>) attributes {dimension_semantics = [#tpu.dimension_semantics<parallel>, #tpu.dimension_semantics<arbitrary>], iteration_bounds = array<i64: 1, 1>, scalar_prefetch = 0 : i64, scratch_operands = 2 : i64, tpu.core_type = #tpu.core_type<tc>, window_params = [{transform_indices = @transform_0, window_bounds = array<i64: 2, 8, 256>}, {pipeline_mode = #tpu.pipeline_mode<synchronous>, transform_indices = @transform_1, window_bounds = array<i64: 8, 2>}, {pipeline_mode = #tpu.pipeline_mode<synchronous>, transform_indices = @transform_2, window_bounds = array<i64: 2, 8>}, {transform_indices = @transform_3, window_bounds = array<i64: 2, 8>}]} {
    %c0_i32 = arith.constant 0 : i32
    %0 = arith.cmpi eq, %arg1, %c0_i32 : i32
    %1 = arith.extui %0 : i1 to i32
    %c0_i32_0 = arith.constant 0 : i32
    %2 = arith.cmpi ne, %1, %c0_i32_0 : i32
    scf.if %2 {
      %cst_14 = arith.constant 0.000000e+00 : f32
      %15 = vector.broadcast %cst_14 : f32 to vector<2x8xf32>
      %c0_15 = arith.constant 0 : index
      %c0_16 = arith.constant 0 : index
      %16 = vector.load %arg6[%c0_15, %c0_16] : memref<2x8xf32, #tpu.memory_space<vmem>>, vector<2x8xf32>
      tpu.vector_store %arg6[%c0_15, %c0_16], %15 {strides = array<i32>} : memref<2x8xf32, #tpu.memory_space<vmem>>, vector<2x8xf32>,
      %cst_17 = arith.constant 0xFF800000 : f32
      %17 = vector.broadcast %cst_17 : f32 to vector<2x8xf32>
      %c0_18 = arith.constant 0 : index
      %c0_19 = arith.constant 0 : index
      %18 = vector.load %arg7[%c0_18, %c0_19] : memref<2x8xf32, #tpu.memory_space<vmem>>, vector<2x8xf32>
      tpu.vector_store %arg7[%c0_18, %c0_19], %17 {strides = array<i32>} : memref<2x8xf32, #tpu.memory_space<vmem>>, vector<2x8xf32>,
    } else {
    }
    %c0 = arith.constant 0 : index
    %c0_1 = arith.constant 0 : index
    %c0_2 = arith.constant 0 : index
    %3 = vector.load %arg2[%c0, %c0_1, %c0_2] : memref<2x8x256xf32, #tpu.memory_space<vmem>>, vector<2x8x256xf32>
    %c0_3 = arith.constant 0 : index
    %c0_4 = arith.constant 0 : index
    %4 = vector.load %arg6[%c0_3, %c0_4] : memref<2x8xf32, #tpu.memory_space<vmem>>, vector<2x8xf32>
    %cst = arith.constant dense<0.000000e+00> : vector<2x8xf32>
    %5 = vector.multi_reduction <add>, %3, %cst [2] : vector<2x8x256xf32> to vector<2x8xf32>
    %6 = arith.addf %4, %5 : vector<2x8xf32>
    %c0_5 = arith.constant 0 : index
    %c0_6 = arith.constant 0 : index
    %7 = vector.load %arg6[%c0_5, %c0_6] : memref<2x8xf32, #tpu.memory_space<vmem>>, vector<2x8xf32>
    tpu.vector_store %arg6[%c0_5, %c0_6], %6 {strides = array<i32>} : memref<2x8xf32, #tpu.memory_space<vmem>>, vector<2x8xf32>,
    %c0_7 = arith.constant 0 : index
    %c0_8 = arith.constant 0 : index
    %8 = vector.load %arg7[%c0_7, %c0_8] : memref<2x8xf32, #tpu.memory_space<vmem>>, vector<2x8xf32>
    %cst_9 = arith.constant dense<0xFF800000> : vector<2x8xf32>
    %9 = vector.multi_reduction <maximumf>, %3, %cst_9 [2] : vector<2x8x256xf32> to vector<2x8xf32>
    %10 = arith.maximumf %8, %9 : vector<2x8xf32>
    %c0_10 = arith.constant 0 : index
    %c0_11 = arith.constant 0 : index
    %11 = vector.load %arg7[%c0_10, %c0_11] : memref<2x8xf32, #tpu.memory_space<vmem>>, vector<2x8xf32>
    tpu.vector_store %arg7[%c0_10, %c0_11], %10 {strides = array<i32>} : memref<2x8xf32, #tpu.memory_space<vmem>>, vector<2x8xf32>,
    %c0_i32_12 = arith.constant 0 : i32
    %12 = arith.cmpi eq, %arg1, %c0_i32_12 : i32
    %13 = arith.extui %12 : i1 to i32
    %c0_i32_13 = arith.constant 0 : i32
    %14 = arith.cmpi ne, %13, %c0_i32_13 : i32
    scf.if %14 {
      %c0_14 = arith.constant 0 : index
      %c0_15 = arith.constant 0 : index
      %15 = vector.load %arg6[%c0_14, %c0_15] : memref<2x8xf32, #tpu.memory_space<vmem>>, vector<2x8xf32>
      %cst_16 = arith.constant 3.906250e-03 : f32
      %16 = vector.broadcast %cst_16 : f32 to vector<2x8xf32>
      %17 = arith.mulf %15, %16 : vector<2x8xf32>
      %c0_17 = arith.constant 0 : index
      %c0_18 = arith.constant 0 : index
      %18 = vector.load %arg7[%c0_17, %c0_18] : memref<2x8xf32, #tpu.memory_space<vmem>>, vector<2x8xf32>
      %c0_19 = arith.constant 0 : index
      %c0_20 = arith.constant 0 : index
      %19 = vector.load %arg3[%c0_19, %c0_20] : memref<8x2xf32, #tpu.memory_space<vmem>>, vector<8x2xf32>
      %cst_21 = arith.constant dense<0.000000e+00> : vector<2x2xf32>
      %20 = tpu.matmul %17, %19, %cst_21 {dimension_numbers = #tpu.dot_dimension_numbers<[1], [0], [0], [1], [0, 0, 1, 1], [], []>} : vector<2x8xf32>, vector<8x2xf32>, vector<2x2xf32> -> vector<2x2xf32>
      %cst_22 = arith.constant 0.000000e+00 : f32
      %21 = vector.broadcast %cst_22 : f32 to vector<2x2xf32>
      %22 = arith.maximumf %20, %21 : vector<2x2xf32>
      %c0_23 = arith.constant 0 : index
      %c0_24 = arith.constant 0 : index
      %23 = vector.load %arg4[%c0_23, %c0_24] : memref<2x8xf32, #tpu.memory_space<vmem>>, vector<2x8xf32>
      %cst_25 = arith.constant dense<0.000000e+00> : vector<2x8xf32>
      %24 = tpu.matmul %22, %23, %cst_25 {dimension_numbers = #tpu.dot_dimension_numbers<[1], [0], [0], [1], [0, 0, 1, 1], [], []>} : vector<2x2xf32>, vector<2x8xf32>, vector<2x8xf32> -> vector<2x8xf32>
      %c0_26 = arith.constant 0 : index
      %c0_27 = arith.constant 0 : index
      %25 = vector.load %arg3[%c0_26, %c0_27] : memref<8x2xf32, #tpu.memory_space<vmem>>, vector<8x2xf32>
      %cst_28 = arith.constant dense<0.000000e+00> : vector<2x2xf32>
      %26 = tpu.matmul %18, %25, %cst_28 {dimension_numbers = #tpu.dot_dimension_numbers<[1], [0], [0], [1], [0, 0, 1, 1], [], []>} : vector<2x8xf32>, vector<8x2xf32>, vector<2x2xf32> -> vector<2x2xf32>
      %cst_29 = arith.constant 0.000000e+00 : f32
      %27 = vector.broadcast %cst_29 : f32 to vector<2x2xf32>
      %28 = arith.maximumf %26, %27 : vector<2x2xf32>
      %c0_30 = arith.constant 0 : index
      %c0_31 = arith.constant 0 : index
      %29 = vector.load %arg4[%c0_30, %c0_31] : memref<2x8xf32, #tpu.memory_space<vmem>>, vector<2x8xf32>
      %cst_32 = arith.constant dense<0.000000e+00> : vector<2x8xf32>
      %30 = tpu.matmul %28, %29, %cst_32 {dimension_numbers = #tpu.dot_dimension_numbers<[1], [0], [0], [1], [0, 0, 1, 1], [], []>} : vector<2x2xf32>, vector<2x8xf32>, vector<2x8xf32> -> vector<2x8xf32>
      %31 = arith.addf %24, %30 : vector<2x8xf32>
      %32 = arith.negf %31 : vector<2x8xf32>
      %33 = math.exp %32 : vector<2x8xf32>
      %cst_33 = arith.constant 1.000000e+00 : f32
      %34 = vector.broadcast %cst_33 : f32 to vector<2x8xf32>
      %35 = arith.addf %34, %33 : vector<2x8xf32>
      %36 = arith.divf %34, %35 : vector<2x8xf32>
      %c0_34 = arith.constant 0 : index
      %c0_35 = arith.constant 0 : index
      %37 = vector.load %arg5[%c0_34, %c0_35] : memref<2x8xf32, #tpu.memory_space<vmem>>, vector<2x8xf32>
      tpu.vector_store %arg5[%c0_34, %c0_35], %36 {strides = array<i32>} : memref<2x8xf32, #tpu.memory_space<vmem>>, vector<2x8xf32>,
    } else {
    }
    return
  }
  func.func @transform_0(%arg0: i32, %arg1: i32) -> (i32, i32, i32) {
    %c0_i32 = arith.constant 0 : i32
    %c0_i32_0 = arith.constant 0 : i32
    return %arg0, %c0_i32, %arg1 : i32, i32, i32
  }
  func.func @transform_1(%arg0: i32, %arg1: i32) -> (i32, i32) {
    %c0_i32 = arith.constant 0 : i32
    %c0_i32_0 = arith.constant 0 : i32
    %c0_i32_1 = arith.constant 0 : i32
    return %c0_i32, %c0_i32_0 : i32, i32
  }
  func.func @transform_2(%arg0: i32, %arg1: i32) -> (i32, i32) {
    %c0_i32 = arith.constant 0 : i32
    %c0_i32_0 = arith.constant 0 : i32
    %c0_i32_1 = arith.constant 0 : i32
    return %c0_i32, %c0_i32_0 : i32, i32
  }
  func.func @transform_3(%arg0: i32, %arg1: i32) -> (i32, i32) {
    %c0_i32 = arith.constant 0 : i32
    %c0_i32_0 = arith.constant 0 : i32
    return %arg0, %c0_i32 : i32, i32
  }
}

</mosaic_0001>

<bundles_post_ra>
// kernel: tpu_custom_call.1
= control target key start
LH: loop header
LB: loop body
LE: loop exit
PB: predicated region body
PF: predicated region fallthrough
CT: control target
= control target key end

     0   :  { %8 = vsyncpa [#allocation5], 0  ;;  %s554_s0 = inlined_call_operand.hbm [shape: f32[2,8,256], index: 0, kind: input, shape index: {}]   ;;  %s555_s1 = inlined_call_operand.vmem [shape: f32[8,2], index: 1, kind: input, shape index: {}]   ;;  %s556_s2 = inlined_call_operand.vmem [shape: f32[2,8], index: 2, kind: input, shape index: {}]   ;;  %s557_s3 = inlined_call_operand.hbm [shape: f32[2,8], index: 3, kind: output, shape index: {}]  }
   0x1   :  { %9 = vsyncpa [#allocation6], 0  ;;  %s506_s12 = smov [#allocation4]  }
   0x2   :  { %s15_s13 = sshll.u32 %s506_s12, 4  ;;  %s16_s13 = int_to_ptr.vmem [resolvable:$true] %s15_s13 }
   0x3   :  { %s470_s14 = scalar_lea.vmem %s16_s13, 512  ;;  %p475_p1 = scmp.lt.s32.totalorder %s16_s13, %s16_s13 }
   0x4   :  { %p471_p0 = scmp.ne.s32.totalorder %s16_s13, %s470_s14  ;;  %p476_p2 = scmp.lt.s32.totalorder %s470_s14, %s470_s14 }
   0x6   :  { %p477_p3 = por %p476_p2, %p475_p1 }
   0x8   :  { %p478_p4 = pnand %p477_p3, %p471_p0 }
   0xa   :  { %481 = shalt.err (!%p478_p4)
}
   0xb   :  { %s507_s15 = smov 256   ;;  %s508_s16 = smov 16  }
   0xc   :  { %21 = dma.hbm_to_vmem [thread:$0]  %s554_s0, 512, %s16_s13, [#allocation5], %s507_s15, %s507_s15, %s508_s16  }
   0xd   :  { %502 = dma.done.wait [#allocation5], 512  }
   0xe   :  { %503 = vsyncadd [#allocation5], 4294966784  ;;  %v36_v0 = vld [vmem:[#allocation4] sm:$0xff]  ;;  %v37_v1 = vld [vmem:[#allocation4 + $0x8] sm:$0xff]  ;;  %vm33_vm0 = vcmask 58368   ;;  %v509_v8 = vmov -inf   ;;  %v49_v11 = vlaneseq }
   0xf   :  { %v38_v2 = vld [vmem:[#allocation4 + $0x10] sm:$0xff]  ;;  %v66_v3 = vmax.f32 %v36_v0, %v37_v1  ;;  %v41_v4 = vadd.f32 %v37_v1, %v36_v0  ;;  %v39_v5 = vld [vmem:[#allocation4 + $0x18] sm:$0xff]  ;;  %35 = vst.msk [vmem:[#allocation3] sm:$0x3] %vm33_vm0, %v509_v8  ;;  %v510_v9 = vmov 0.0   ;;  %vm511_vm1 = vmmov 0  }
  0x10   :  { %v69_v6 = vmax.f32 %v38_v2, %v39_v5  ;;  %v44_v7 = vadd.f32 %v39_v5, %v38_v2  ;;  %34 = vst.msk [vmem:[#allocation2] sm:$0x3] %vm33_vm0, %v510_v9  ;;  %436 = vmatprep.subr.mxu1 %v510_v9  ;;  %431 = vmatprep.subr.mxu0 %v510_v9  ;;  %v92_v10 = vld [vmem:[%s555_s1] sm:$0xff]  ;;  %v50_v12 = vand.u32 127, %v49_v11  ;;  %v52_v13 = vshrl.u32 %v49_v11, 7 }
  0x11   :  { %67 = vmax.xlane.f32.xlu1 %v66_v3  ;;  %42 = vadd.xlane.f32.xlu0 %v41_v4  ;;  %vm59_vm2 = vcmask 1041409   ;;  %vm93_vm3 = vcmask 64512   ;;  %v168_v32 = vld [vmem:[%s556_s2] sm:$0x3]  ;;  %vm247_vm4 = vcmask 1041408   ;;  %vm243_vm5 = vcmask 15360  }
  0x12   :  { %437 = vmatpush3.msra.mxu1 %v92_v10  ;;  %438 = vmatprep.mubr.msk.f32.mxu1 %vm511_vm1, %v510_v9  ;;  %v53_v16 = vsub.s32 %v50_v12, %v52_v13  ;;  %s512_s2 = smov [#allocation7]  }
  0x13   :  { %432 = vmatpush3.msra.mxu0 %v92_v10  ;;  %433 = vmatprep.mubr.msk.f32.mxu0 %vm511_vm1, %v510_v9  ;;  %s407_s21 = sshll.u32 %s512_s2, 4  ;;  %s408_s21 = int_to_ptr.vmem [resolvable:$true] %s407_s21 }
  0x14   :  { %441 = vmatprep.subr.mxu0 %v510_v9  ;;  %446 = vmatprep.subr.mxu1 %v510_v9  ;;  %s482_s22 = scalar_lea.vmem %s408_s21, 32  ;;  %p487_p6 = scmp.lt.s32.totalorder %s408_s21, %s408_s21 }
  0x15   :  { %70 = vmax.xlane.f32.xlu1 %v69_v6  ;;  %45 = vadd.xlane.f32.xlu0 %v44_v7  ;;  %p483_p5 = scmp.ne.s32.totalorder %s408_s21, %s482_s22  ;;  %p488_p7 = scmp.lt.s32.totalorder %s482_s22, %s482_s22 }
  0x16   :  { %v65_v21 = vld [vmem:[#allocation3] sm:$0x3] }
  0x17   :  { %v40_v23 = vld [vmem:[#allocation2] sm:$0x3]  ;;  %p489_p8 = por %p488_p7, %p487_p6 }
  0x19   :  { %p490_p9 = pnand %p489_p8, %p483_p5 }
  0x9a   :  { %v68_v14 = vpop.xlane.xlu1 %67  ;;  %v43_v15 = vpop.xlane.xlu0 %42 }
  0x9b   :  { %v77_v19 = vrot.slane %v68_v14, %v53_v16  ;;  %v54_v20 = vrot.slane %v43_v15, %v53_v16 }
  0x9e   :  { %v71_v17 = vpop.xlane.xlu1 %70  ;;  %v46_v18 = vpop.xlane.xlu0 %45 }
  0x9f   :  { %v81_v22 = vrot.slane %v71_v17, %v53_v16  ;;  %v58_v24 = vrot.slane %v46_v18, %v53_v16 }
  0xa1   :  { %v82_v25 = vsel %vm59_vm2, %v81_v22, %v77_v19  ;;  %v60_v26 = vsel %vm59_vm2, %v58_v24, %v54_v20 }
  0xa2   :  { %v84_v27 = vmax.f32 %v65_v21, %v82_v25  ;;  %v62_v28 = vadd.f32 %v60_v26, %v40_v23 }
  0xa4   :  { %85 = vst.msk [vmem:[#allocation3] sm:$0x3] %vm33_vm0, %v84_v27  ;;  %64 = vst.msk [vmem:[#allocation2] sm:$0x3] %vm33_vm0, %v62_v28 }
  0xab   :  { %v91_v29 = vld [vmem:[#allocation3] sm:$0x3]  ;;  %v89_v30 = vld [vmem:[#allocation2] sm:$0x3] }
  0xac   :  { %439 = vmatmul.mubr.msk.f32.vlgmr.msra.gmra.mxu1 %vm93_vm3, %v91_v29  ;;  %v90_v31 = vmul.f32 0.00390625, %v89_v30 }
  0xad   :  { %448 = vmatprep.mubr.msk.f32.mxu1 %vm511_vm1, %v510_v9  ;;  %447 = vmatpush3.msk.msra.mxu1 %vm247_vm4, %v168_v32 }
  0xae   :  { %434 = vmatmul.mubr.msk.f32.vlgmr.msra.gmra.mxu0 %vm93_vm3, %v90_v31 }
  0xaf   :  { %443 = vmatprep.mubr.msk.f32.mxu0 %vm511_vm1, %v510_v9  ;;  %442 = vmatpush3.msk.msra.mxu0 %vm247_vm4, %v168_v32 }
 0x16c   :  { %v238_v33 = vpop.f32.mrf.mxu1 }
 0x16d   :  { %v242_v34 = vmax.f32 %v238_v33, 0.0 }
 0x16e   :  { %v163_v35 = vpop.f32.mrf.mxu0  ;;  %v440_v36 = vpop.f32.mrf.mxu1 }
 0x16f   :  { %v167_v37 = vmax.f32 %v163_v35, 0.0  ;;  %444 = vmatmul.mubr.msk.f32.vlgmr.msra.gmra.mxu0 %vm243_vm5, %v242_v34 }
 0x170   :  { %v435_v38 = vpop.f32.mrf.mxu0 }
 0x171   :  { %449 = vmatmul.mubr.msk.f32.vlgmr.msra.gmra.mxu1 %vm243_vm5, %v167_v37 }
 0x22f   :  { %v317_v39 = vpop.f32.mrf.mxu0 }
 0x231   :  { %v445_v40 = vpop.f32.mrf.mxu0  ;;  %v390_v41 = vpop.f32.mrf.mxu1 }
 0x232   :  { %v391_v42 = vadd.f32 %v390_v41, %v317_v39 }
 0x233   :  { %v450_v43 = vpop.f32.mrf.mxu1 }
 0x234   :  { %v422_v44 = vmul.f32 -1.442695, %v391_v42 }
 0x236   :  { %458 = vpow2.f32 %v422_v44 }
 0x243   :  { %v459_v45 = vpop.eup %458 }
 0x244   :  { %v397_v46 = vadd.f32 1.0, %v459_v45 }
 0x246   :  { %460 = vrcp.f32 %v397_v46 }
 0x253   :  { %v461_v47 = vpop.eup %460 }
 0x254   :  { %400 = vst.msk [vmem:[#allocation7] sm:$0x3] %vm33_vm0, %v461_v47 }
 0x255   :  { %493 = shalt.err (!%p490_p9)
}
 0x256   :  { %410 = dma.vmem_to_hbm [thread:$0]  %s408_s21, 32, %s557_s3, [#allocation6]  }
 0x257   :  { %504 = dma.done.wait [#allocation6], 32  }
 0x258   :  { %505 = vsyncadd [#allocation6], 4294967264 }
 0x259   :  { %414 = vsyncpa [#allocation5], 1 }
 0x25a   :  { %415 = vsyncpa [#allocation6], 1 }

</bundles_post_ra>
